<compile_context>
chip_gen: v6e
topology: v6e:2x2x1
jax: 0.10.0
libtpu: 0.0.40
codegen_flags: <defaults>
</compile_context>

<pallas_src>
import math

import jax
import jax.numpy as jnp
from jax import lax
from jax.experimental import pallas as pl
from jax.experimental.pallas import tpu as pltpu

# TemporalEmbedding sizes for disting='1h' (no minute table).
MONTH_SIZE, DAY_SIZE, HOUR_SIZE = 13, 32, 24
VOCAB = MONTH_SIZE + DAY_SIZE + HOUR_SIZE  # 69


def _round_up(x, m):
    return (x + m - 1) // m * m


def sinusoidal_table(n_pos, d_model):
    """Identical to the PyTorch FixedEmbedding / PositionalEmbedding buffers."""
    position = jnp.arange(n_pos, dtype=jnp.float32)[:, None]
    div_term = jnp.exp(jnp.arange(0, d_model, 2, dtype=jnp.float32)
                       * -(math.log(10000.0) / d_model))
    ang = position * div_term
    w = jnp.zeros((n_pos, d_model), dtype=jnp.float32)
    w = w.at[:, 0::2].set(jnp.sin(ang))
    w = w.at[:, 1::2].set(jnp.cos(ang)[:, : d_model // 2])
    return w


def _data_embedding_kernel(xcat_ref, marks_ref, wcat_ref, ttab_ref, pe_ref, o_ref):
    # xcat_ref : (TL, 3*c_in) f32   -- [x_{l-1} | x_l | x_{l+1}] features
    # marks_ref: (TL, 3)      i32   -- [month, day, hour]
    # wcat_ref : (3*c_in, D)  f32   -- stacked circular-conv taps (VMEM-resident)
    # ttab_ref : (69, D)      f32   -- stacked month|day|hour sinusoidal tables
    # pe_ref   : (TL, D)      f32   -- positional-encoding rows for this tile
    # o_ref    : (TL, D)      out dtype (bf16 by default)
    tok = jnp.dot(xcat_ref[...], wcat_ref[...],
                  preferred_element_type=jnp.float32)

    marks = marks_ref[...]
    tl = marks.shape[0]
    col = lax.broadcasted_iota(jnp.int32, (tl, VOCAB), 1)
    # The three index ranges are disjoint -> OR the one-hots, single cast.
    multi_hot = ((col == marks[:, 0:1])                                   # month
                 | (col == marks[:, 1:2] + MONTH_SIZE)                    # day
                 | (col == marks[:, 2:3] + (MONTH_SIZE + DAY_SIZE))       # hour
                 ).astype(jnp.float32)
    temporal = jnp.dot(multi_hot, ttab_ref[...],
                       preferred_element_type=jnp.float32)

    # f32 accumulate, cast on the final (dominant) HBM store.
    o_ref[...] = (tok + temporal + pe_ref[...]).astype(o_ref.dtype)
    # TODO(synk): train-mode dropout (p=0.1) omitted -- forward implemented in
    # eval mode; add pltpu.prng_seed/prng_random_bits masking (per-tile-unique
    # seed, e.g. seed + pl.program_id(0)) for training parity.


def init_data_embedding(key, c_in, d_model, max_len=5000):
    """Parameters/buffers of DataEmbedding(coding_type='12', disting='1h')."""
    # TokenEmbedding: Conv1d(c_in, d_model, k=3, circular, bias=False),
    # kaiming_normal(fan_in, leaky_relu)-style init.
    fan_in = c_in * 3
    gain = math.sqrt(2.0 / (1.0 + 0.01 ** 2))
    w_conv = (gain / math.sqrt(fan_in)) * jax.random.normal(
        key, (d_model, c_in, 3), dtype=jnp.float32)
    # Kernel-friendly layouts, built ONCE here (not per forward call):
    w_cat = jnp.concatenate(
        [w_conv[:, :, 0].T, w_conv[:, :, 1].T, w_conv[:, :, 2].T], axis=0)  # (3c,D)
    temp_table = jnp.concatenate(
        [sinusoidal_table(MONTH_SIZE, d_model),
         sinusoidal_table(DAY_SIZE, d_model),
         sinusoidal_table(HOUR_SIZE, d_model)], axis=0)                     # (69,D)
    pe_table = sinusoidal_table(max_len, d_model)      # PyTorch-style pe buffer
    return {"w_conv": w_conv, "w_cat": w_cat, "temp_table": temp_table,
            "pe_table": pe_table}


def _pick_tiling(B, L, tile_l):
    """Return (Lp, TL): per-sequence (possibly padded) length and token-tile
    length with  (B*Lp) % TL == 0,  (TL % Lp == 0 or Lp % TL == 0)  and
    (TL % 8 == 0 or TL == B*Lp).  Prefers choices that need no padding."""
    def attempt(Lc):
        N = B * Lc
        if N <= tile_l:
            return Lc, N                                # one full-dim block
        if Lc <= tile_l:
            for k in range(min(tile_l // Lc, B), 0, -1):   # whole seqs / tile
                if B % k == 0 and (k * Lc) % 8 == 0:
                    return Lc, k * Lc
            return None
        for t in range(tile_l - tile_l % 8, 7, -8):        # subdivide one seq
            if Lc % t == 0:
                return Lc, t
        return None

    got = attempt(L)
    if got is None:
        # Unfriendly L: pad each sequence up to a decent tile multiple
        # (pays one output-slice copy after the kernel -- rare fallback).
        pad_to = max(8, min(512, tile_l - tile_l % 8))
        got = attempt(_round_up(L, pad_to))
    assert got is not None
    return got


def data_embedding(params, x, x_mark, *, tile_l=1024, out_dtype=jnp.bfloat16,
                   vmem_limit_bytes=None):
    """Fused DataEmbedding forward (eval mode).

    x: (B, L, c_in) float, x_mark: (B, L, >=3) int time marks [month, day, hour].
    Returns (B, L, d_model) in `out_dtype` (bf16 default halves the dominant
    HBM output stream; pass jnp.float32 for a full-precision output).
    tile_l=1024 suits v5e/v6e default scoped VMEM; on v7x use 2048-4096 with
    vmem_limit_bytes (e.g. 48<<20) so the two TCs get large parallel tiles.
    """
    B, L, c_in = x.shape
    w_cat = params["w_cat"]
    d_model = w_cat.shape[1]
    temp_table = params["temp_table"]
    pe_table = params["pe_table"]

    Lp, TL = _pick_tiling(B, L, max(8, int(tile_l)))

    # Circular conv as a matmul: concat the three shifted copies along features
    # (the circular wrap is per-sequence, so roll BEFORE any padding/flatten).
    x_cat = jnp.concatenate(
        [jnp.roll(x, 1, axis=1), x, jnp.roll(x, -1, axis=1)], axis=-1)   # (B,L,3c)
    marks = x_mark[..., :3].astype(jnp.int32)                            # (B,L,3)
    if Lp != L:
        x_cat = jnp.pad(x_cat, ((0, 0), (0, Lp - L), (0, 0)))
        marks = jnp.pad(marks, ((0, 0), (0, Lp - L), (0, 0)))

    # Flatten (B, Lp) into one token axis.
    N = B * Lp
    x_cat = x_cat.reshape(N, 3 * c_in)
    marks = marks.reshape(N, 3)
    assert N % TL == 0

    # Positional encoding as ONE periodic block: DMA'd once per distinct block
    # (not once per batch element / grid step).
    assert Lp <= pe_table.shape[0], "increase max_len in init_data_embedding"
    pe_period = pe_table[:Lp]
    if TL % Lp == 0:                       # whole sequences packed per tile
        pe_in = jnp.tile(pe_period, (TL // Lp, 1))                       # (TL,D)
        n_pe_blocks = 1
    else:                                  # Lp % TL == 0: tiles subdivide a seq
        pe_in = pe_period                                                # (Lp,D)
        n_pe_blocks = Lp // TL
    if n_pe_blocks == 1:
        pe_index_map = lambda i: (0, 0)
    else:
        pe_index_map = lambda i: (i % n_pe_blocks, 0)

    grid = (N // TL,)
    out_bytes = N * d_model * jnp.dtype(out_dtype).itemsize
    flops = 2 * N * (3 * c_in + VOCAB) * d_model
    bytes_accessed = (4 * N * 3 * c_in + 4 * N * 3 + 4 * 3 * c_in * d_model
                      + 4 * VOCAB * d_model + 4 * pe_in.shape[0] * d_model
                      + out_bytes)

    # NOTE: marks stay a separate (TL,3) i32 block (lane-padded in VMEM) and
    # the two small-K matmuls stay separate -- both fusions were flagged as
    # secondary polish and need unaligned lane concat/slice tricks; the kernel
    # is memory-bound so the HBM-side fixes above dominate.
    out = pl.pallas_call(
        _data_embedding_kernel,
        out_shape=jax.ShapeDtypeStruct((N, d_model), out_dtype),
        grid_spec=pltpu.PrefetchScalarGridSpec(
            num_scalar_prefetch=0,
            grid=grid,
            in_specs=[
                pl.BlockSpec((TL, 3 * c_in), lambda i: (i, 0)),
                pl.BlockSpec((TL, 3), lambda i: (i, 0)),
                pl.BlockSpec((3 * c_in, d_model), lambda i: (0, 0)),
                pl.BlockSpec((VOCAB, d_model), lambda i: (0, 0)),
                pl.BlockSpec((TL, d_model), pe_index_map),
            ],
            out_specs=pl.BlockSpec((TL, d_model), lambda i: (i, 0)),
        ),
        compiler_params=pltpu.CompilerParams(
            dimension_semantics=("parallel",),
            vmem_limit_bytes=vmem_limit_bytes),
        cost_estimate=pl.CostEstimate(
            flops=flops, transcendentals=0, bytes_accessed=bytes_accessed),
    )(x_cat, marks, w_cat, temp_table, pe_in)

    out = out.reshape(B, Lp, d_model)
    return out[:, :L, :] if Lp != L else out


def data_embedding_reference(params, x, x_mark):
    """Pure-JAX reference matching the PyTorch forward (eval mode)."""
    hi = lax.Precision.HIGHEST
    w_conv = params["w_conv"]
    ttab = params["temp_table"]
    month_t = ttab[:MONTH_SIZE]
    day_t = ttab[MONTH_SIZE:MONTH_SIZE + DAY_SIZE]
    hour_t = ttab[MONTH_SIZE + DAY_SIZE:]
    _, L, _ = x.shape
    d_model = w_conv.shape[0]
    shifts = (jnp.roll(x, 1, axis=1), x, jnp.roll(x, -1, axis=1))
    tok = sum(jnp.einsum("blc,dc->bld", s, w_conv[:, :, k], precision=hi)
              for k, s in enumerate(shifts))
    xm = x_mark[..., :3].astype(jnp.int32)
    temporal = month_t[xm[..., 0]] + day_t[xm[..., 1]] + hour_t[xm[..., 2]]
    pos = sinusoidal_table(L, d_model)[None]
    return tok + temporal + pos


if __name__ == "__main__":
    # Small shapes implied by the forward: x (B,L,c_in) values, x_mark (B,L,3)
    # integer time marks; d_model a multiple of 128 for lane-dense stores.
    B, L, c_in, d_model = 2, 16, 4, 128

    key = jax.random.PRNGKey(0)
    k_w, k_x, k_mo, k_da, k_ho = jax.random.split(key, 5)

    params = init_data_embedding(k_w, c_in, d_model)
    x = jax.random.normal(k_x, (B, L, c_in), dtype=jnp.float32)
    x_mark = jnp.stack(
        [jax.random.randint(k_mo, (B, L), 0, MONTH_SIZE, dtype=jnp.int32),
         jax.random.randint(k_da, (B, L), 0, DAY_SIZE, dtype=jnp.int32),
         jax.random.randint(k_ho, (B, L), 0, HOUR_SIZE, dtype=jnp.int32)],
        axis=-1)

    ref = data_embedding_reference(params, x, x_mark)

    # 1) full-precision output path (packed-sequence tiling, tight tolerance)
    y32 = jax.block_until_ready(
        data_embedding(params, x, x_mark, out_dtype=jnp.float32))
    assert y32.shape == (B, L, d_model)
    err32 = float(jnp.max(jnp.abs(y32 - ref)))
    assert err32 < 1e-4, f"f32 mismatch vs reference: max abs err = {err32}"

    # 2) default bf16-output path (halved HBM store stream)
    ybf = jax.block_until_ready(data_embedding(params, x, x_mark))
    assert ybf.dtype == jnp.bfloat16 and ybf.shape == (B, L, d_model)
    errbf = float(jnp.max(jnp.abs(ybf.astype(jnp.float32) - ref)))
    assert errbf < 1e-1, f"bf16 mismatch vs reference: max abs err = {errbf}"

    # 3) exercise the long-sequence path (tiles subdivide a sequence, PE block
    #    reused via i % (L // TL) index map)
    ysub = jax.block_until_ready(
        data_embedding(params, x, x_mark, tile_l=8, out_dtype=jnp.float32))
    errsub = float(jnp.max(jnp.abs(ysub - ref)))
    assert errsub < 1e-4, f"subdivided-tile mismatch: max abs err = {errsub}"

    print("KERNEL_OK")
</pallas_src>

<mosaic_0001>
module attributes {stable_mosaic.version = 11 : i64} {
  func.func @_data_embedding_kernel(%arg0: i32, %arg1: memref<32x12xf32, #tpu.memory_space<vmem>>, %arg2: memref<32x3xi32, #tpu.memory_space<vmem>>, %arg3: memref<12x128xf32, #tpu.memory_space<vmem>>, %arg4: memref<69x128xf32, #tpu.memory_space<vmem>>, %arg5: memref<32x128xf32, #tpu.memory_space<vmem>>, %arg6: memref<32x128xf32, #tpu.memory_space<vmem>>) attributes {dimension_semantics = [#tpu.dimension_semantics<parallel>], iteration_bounds = array<i64: 1>, scalar_prefetch = 0 : i64, scratch_operands = 0 : i64, tpu.core_type = #tpu.core_type<tc>, window_params = [{transform_indices = @transform_0, window_bounds = array<i64: 32, 12>}, {transform_indices = @transform_1, window_bounds = array<i64: 32, 3>}, {pipeline_mode = #tpu.pipeline_mode<synchronous>, transform_indices = @transform_2, window_bounds = array<i64: 12, 128>}, {pipeline_mode = #tpu.pipeline_mode<synchronous>, transform_indices = @transform_3, window_bounds = array<i64: 69, 128>}, {pipeline_mode = #tpu.pipeline_mode<synchronous>, transform_indices = @transform_4, window_bounds = array<i64: 32, 128>}, {transform_indices = @transform_5, window_bounds = array<i64: 32, 128>}]} {
    %c0 = arith.constant 0 : index
    %c0_0 = arith.constant 0 : index
    %0 = vector.load %arg1[%c0, %c0_0] : memref<32x12xf32, #tpu.memory_space<vmem>>, vector<32x12xf32>
    %c0_1 = arith.constant 0 : index
    %c0_2 = arith.constant 0 : index
    %1 = vector.load %arg3[%c0_1, %c0_2] : memref<12x128xf32, #tpu.memory_space<vmem>>, vector<12x128xf32>
    %cst = arith.constant dense<0.000000e+00> : vector<32x128xf32>
    %2 = tpu.matmul %0, %1, %cst {dimension_numbers = #tpu.dot_dimension_numbers<[1], [0], [0], [1], [0, 0, 1, 1], [], []>} : vector<32x12xf32>, vector<12x128xf32>, vector<32x128xf32> -> vector<32x128xf32>
    %c0_3 = arith.constant 0 : index
    %c0_4 = arith.constant 0 : index
    %3 = vector.load %arg2[%c0_3, %c0_4] : memref<32x3xi32, #tpu.memory_space<vmem>>, vector<32x3xi32>
    %4 = tpu.iota {dimensions = array<i32: 1>} : vector<32x69xi32>
    %5 = vector.extract_strided_slice %3 {offsets = [0, 0], sizes = [32, 1], strides = [1, 1]} : vector<32x3xi32> to vector<32x1xi32>
    %6 = vector.broadcast %5 : vector<32x1xi32> to vector<32x69xi32>
    %7 = arith.cmpi eq, %4, %6 : vector<32x69xi32>
    %8 = vector.extract_strided_slice %3 {offsets = [0, 1], sizes = [32, 1], strides = [1, 1]} : vector<32x3xi32> to vector<32x1xi32>
    %c13_i32 = arith.constant 13 : i32
    %9 = vector.broadcast %c13_i32 : i32 to vector<32x1xi32>
    %10 = arith.addi %8, %9 : vector<32x1xi32>
    %11 = vector.broadcast %10 : vector<32x1xi32> to vector<32x69xi32>
    %12 = arith.cmpi eq, %4, %11 : vector<32x69xi32>
    %13 = arith.ori %7, %12 : vector<32x69xi1>
    %14 = vector.extract_strided_slice %3 {offsets = [0, 2], sizes = [32, 1], strides = [1, 1]} : vector<32x3xi32> to vector<32x1xi32>
    %c45_i32 = arith.constant 45 : i32
    %15 = vector.broadcast %c45_i32 : i32 to vector<32x1xi32>
    %16 = arith.addi %14, %15 : vector<32x1xi32>
    %17 = vector.broadcast %16 : vector<32x1xi32> to vector<32x69xi32>
    %18 = arith.cmpi eq, %4, %17 : vector<32x69xi32>
    %19 = arith.ori %13, %18 : vector<32x69xi1>
    %20 = arith.extui %19 : vector<32x69xi1> to vector<32x69xi32>
    %21 = arith.sitofp %20 : vector<32x69xi32> to vector<32x69xf32>
    %c0_5 = arith.constant 0 : index
    %c0_6 = arith.constant 0 : index
    %22 = vector.load %arg4[%c0_5, %c0_6] : memref<69x128xf32, #tpu.memory_space<vmem>>, vector<69x128xf32>
    %cst_7 = arith.constant dense<0.000000e+00> : vector<32x128xf32>
    %23 = tpu.matmul %21, %22, %cst_7 {dimension_numbers = #tpu.dot_dimension_numbers<[1], [0], [0], [1], [0, 0, 1, 1], [], []>} : vector<32x69xf32>, vector<69x128xf32>, vector<32x128xf32> -> vector<32x128xf32>
    %24 = arith.addf %2, %23 : vector<32x128xf32>
    %c0_8 = arith.constant 0 : index
    %c0_9 = arith.constant 0 : index
    %25 = vector.load %arg5[%c0_8, %c0_9] : memref<32x128xf32, #tpu.memory_space<vmem>>, vector<32x128xf32>
    %26 = arith.addf %24, %25 : vector<32x128xf32>
    %c0_10 = arith.constant 0 : index
    %c0_11 = arith.constant 0 : index
    %27 = vector.load %arg6[%c0_10, %c0_11] : memref<32x128xf32, #tpu.memory_space<vmem>>, vector<32x128xf32>
    tpu.vector_store %arg6[%c0_10, %c0_11], %26 {strides = array<i32>} : memref<32x128xf32, #tpu.memory_space<vmem>>, vector<32x128xf32>,
    return
  }
  func.func @transform_0(%arg0: i32) -> (i32, i32) {
    %c0_i32 = arith.constant 0 : i32
    %c0_i32_0 = arith.constant 0 : i32
    return %arg0, %c0_i32 : i32, i32
  }
  func.func @transform_1(%arg0: i32) -> (i32, i32) {
    %c0_i32 = arith.constant 0 : i32
    %c0_i32_0 = arith.constant 0 : i32
    return %arg0, %c0_i32 : i32, i32
  }
  func.func @transform_2(%arg0: i32) -> (i32, i32) {
    %c0_i32 = arith.constant 0 : i32
    %c0_i32_0 = arith.constant 0 : i32
    %c0_i32_1 = arith.constant 0 : i32
    return %c0_i32, %c0_i32_0 : i32, i32
  }
  func.func @transform_3(%arg0: i32) -> (i32, i32) {
    %c0_i32 = arith.constant 0 : i32
    %c0_i32_0 = arith.constant 0 : i32
    %c0_i32_1 = arith.constant 0 : i32
    return %c0_i32, %c0_i32_0 : i32, i32
  }
  func.func @transform_4(%arg0: i32) -> (i32, i32) {
    %c0_i32 = arith.constant 0 : i32
    %c0_i32_0 = arith.constant 0 : i32
    %c0_i32_1 = arith.constant 0 : i32
    return %c0_i32, %c0_i32_0 : i32, i32
  }
  func.func @transform_5(%arg0: i32) -> (i32, i32) {
    %c0_i32 = arith.constant 0 : i32
    %c0_i32_0 = arith.constant 0 : i32
    return %arg0, %c0_i32 : i32, i32
  }
}

</mosaic_0001>

<bundles_post_ra>
// kernel: tpu_custom_call.1
= control target key start
LH: loop header
LB: loop body
LE: loop exit
PB: predicated region body
PF: predicated region fallthrough
CT: control target
= control target key end

     0   :  { %10 = vsyncpa [#allocation3], 0  ;;  %s605_s0 = inlined_call_operand.vmem [shape: f32[32,12], index: 0, kind: input, shape index: {}]   ;;  %s606_s1 = inlined_call_operand.vmem [shape: s32[32,3], index: 1, kind: input, shape index: {}]   ;;  %s607_s2 = inlined_call_operand.vmem [shape: f32[12,128], index: 2, kind: input, shape index: {}]   ;;  %s608_s3 = inlined_call_operand.vmem [shape: f32[69,128], index: 3, kind: input, shape index: {}]   ;;  %s609_s4 = inlined_call_operand.hbm [shape: f32[32,128], index: 4, kind: input, shape index: {}]   ;;  %s610_s5 = inlined_call_operand.hbm [shape: f32[32,128], index: 5, kind: output, shape index: {}]  }
   0x1   :  { %11 = vsyncpa [#allocation4], 0  ;;  %s490_s18 = smov [#allocation2]  }
   0x2   :  { %s25_s19 = sshll.u32 %s490_s18, 4  ;;  %s26_s19 = int_to_ptr.vmem [resolvable:$true] %s25_s19 }
   0x3   :  { %s454_s20 = scalar_lea.vmem %s26_s19, 512  ;;  %p459_p1 = scmp.lt.s32.totalorder %s26_s19, %s26_s19 }
   0x4   :  { %p455_p0 = scmp.ne.s32.totalorder %s26_s19, %s454_s20  ;;  %p460_p2 = scmp.lt.s32.totalorder %s454_s20, %s454_s20 }
   0x6   :  { %p461_p3 = por %p460_p2, %p459_p1 }
   0x8   :  { %p462_p4 = pnand %p461_p3, %p455_p0 }
   0xa   :  { %465 = shalt.err (!%p462_p4)
}
   0xb   :  { %s491_s21 = smov 128   ;;  %s492_s22 = smov 8  }
   0xc   :  { %31 = dma.hbm_to_vmem [thread:$0]  %s609_s4, 512, %s26_s19, [#allocation3], %s491_s21, %s491_s21, %s492_s22  }
   0xd   :  { %486 = dma.done.wait [#allocation3], 512  }
   0xe   :  { %487 = vsyncadd [#allocation3], 4294966784  ;;  %v493_v0 = vmov 0   ;;  %v42_v1 = vld [vmem:[%s606_s1 + $0x8] sm:$0xff]  ;;  %v41_v2 = vld [vmem:[%s606_s1] sm:$0xff]  ;;  %vm141_vm0 = vcmask 1044480   ;;  %v45_v30 = vlaneseq }
   0xf   :  { %437 = vset.pattern.permute.xlu1 %v493_v0  ;;  %436 = vset.pattern.permute.xlu0 %v493_v0  ;;  %v64_v3 = vadd.s32 13, %v42_v1  ;;  %v63_v4 = vadd.s32 13, %v41_v2  ;;  %v127_v5 = vld [vmem:[%s608_s3 + $0x40] sm:$0x1f]  ;;  %v126_v6 = vld [vmem:[%s608_s3 + $0x38] sm:$0xff]  ;;  %v494_v7 = vmov 1  }
  0x10   :  { %51 = vperm.xlu1 %437, %v42_v1   ;;  %48 = vperm.xlu0 %436, %v41_v2   ;;  %v125_v8 = vld [vmem:[%s608_s3 + $0x30] sm:$0xff]  ;;  %v87_v9 = vadd.s32 45, %v41_v2  ;;  %v44_v10 = vld [vmem:[%s606_s1 + $0x18] sm:$0xff]  ;;  %v495_v11 = vmov 2   ;;  %v124_v12 = vld [vmem:[%s608_s3 + $0x28] sm:$0xff]  ;;  %vm243_vm1 = vcmask 1043456  }
  0x11   :  { %394 = vmatprep.subr.msk.mxu0 %vm141_vm0, %v127_v5  ;;  %v40_v13 = vld [vmem:[%s607_s2 + $0x8] sm:$0xf]  ;;  %v88_v14 = vadd.s32 45, %v42_v1  ;;  %v39_v15 = vld [vmem:[%s607_s2] sm:$0xff]  ;;  %v43_v16 = vld [vmem:[%s606_s1 + $0x10] sm:$0xff]  ;;  %vm230_vm2 = vcmask 97280  }
  0x12   :  { %395 = vmatpush3.msk.msra.mxu0 %vm141_vm0, %v127_v5  ;;  %418 = vmatprep.subr.msk.mxu1 %vm243_vm1, %v40_v13  ;;  %v123_v17 = vld [vmem:[%s608_s3 + $0x20] sm:$0xff]  ;;  %v90_v19 = vadd.s32 45, %v44_v10  ;;  %v122_v20 = vld [vmem:[%s608_s3 + $0x18] sm:$0xff]  ;;  %v36_v21 = vld [vmem:[%s605_s0 + $0x8] sm:$0xff]  ;;  %v65_v22 = vadd.s32 13, %v43_v16  ;;  %v66_v24 = vadd.s32 13, %v44_v10 }
  0x13   :  { %396 = vmatprep.subr.mxu0 %v126_v6  ;;  %419 = vmatpush3.msk.msra.mxu1 %vm243_vm1, %v40_v13  ;;  %v35_v18 = vld [vmem:[%s605_s0] sm:$0xff]  ;;  %v121_v23 = vld [vmem:[%s608_s3 + $0x10] sm:$0xff]  ;;  %v120_v25 = vld [vmem:[%s608_s3 + $0x8] sm:$0xff]  ;;  %v89_v27 = vadd.s32 45, %v43_v16  ;;  %v46_v33 = vand.u32 127, %v45_v30  ;;  %vm128_vm7 = vcmask 564224  }
  0x14   :  { %439 = vset.pattern.permute.xlu1 %v494_v7  ;;  %438 = vset.pattern.permute.xlu0 %v494_v7  ;;  %v119_v26 = vld [vmem:[%s608_s3] sm:$0xff]  ;;  %v37_v28 = vld [vmem:[%s605_s0 + $0x10] sm:$0xff]  ;;  %v38_v29 = vld [vmem:[%s605_s0 + $0x18] sm:$0xff]  ;;  %v496_v38 = vmov 0.0   ;;  %s497_s0 = smov [#allocation5]  }
  0x15   :  { %71 = vperm.xlu1 %439, %v64_v3   ;;  %68 = vperm.xlu0 %438, %v63_v4   ;;  %v333_v51 = vld [vmem:[#allocation2 + $0x8] sm:$0xff]  ;;  %v332_v55 = vld [vmem:[#allocation2] sm:$0xff]  ;;  %v335_v61 = vld [vmem:[#allocation2 + $0x18] sm:$0xff]  ;;  %s349_s3 = sshll.u32 %s497_s0, 4  ;;  %s350_s3 = int_to_ptr.vmem [resolvable:$true] %s349_s3 }
  0x16   :  { %397 = vmatpush3.msra.mxu0 %v126_v6  ;;  %420 = vmatprep.subr.mxu1 %v39_v15  ;;  %v334_v1 = vld [vmem:[#allocation2 + $0x10] sm:$0xff]  ;;  %s466_s11 = scalar_lea.vmem %s350_s3, 512  ;;  %p471_p6 = scmp.lt.s32.totalorder %s350_s3, %s350_s3 }
  0x17   :  { %398 = vmatprep.subr.mxu0 %v125_v8  ;;  %421 = vmatpush3.msra.mxu1 %v39_v15  ;;  %p467_p5 = scmp.ne.s32.totalorder %s350_s3, %s466_s11  ;;  %p472_p7 = scmp.lt.s32.totalorder %s466_s11, %s466_s11 }
  0x18   :  { %399 = vmatpush3.msra.mxu0 %v125_v8  ;;  %422 = vmatprep.mubr.msk.f32.mxu1 %vm230_vm2, %v35_v18 }
  0x19   :  { %440 = vset.pattern.permute.xlu1 %v495_v11  ;;  %443 = vset.pattern.permute.xlu0 %v493_v0  ;;  %p473_p8 = por %p472_p7, %p471_p6 }
  0x1a   :  { %92 = vperm.xlu1 %440, %v87_v9   ;;  %57 = vperm.xlu0 %443, %v44_v10  }
  0x1b   :  { %400 = vmatprep.subr.mxu0 %v124_v12  ;;  %423 = vmatmul.mubr.msk.f32.vlgmr.msra.gmra.mxu1 %vm230_vm2, %v36_v21  ;;  %p474_p9 = pnand %p473_p8, %p467_p5 }
  0x1c   :  { %401 = vmatpush3.msra.mxu0 %v124_v12  ;;  %425 = vmatprep.mubr.msk.f32.mxu1 %vm230_vm2, %v37_v28 }
  0x1d   :  { %402 = vmatprep.subr.mxu0 %v123_v17 }
  0x1e   :  { %441 = vset.pattern.permute.xlu1 %v493_v0  ;;  %444 = vset.pattern.permute.xlu0 %v495_v11 }
  0x1f   :  { %54 = vperm.xlu1 %441, %v43_v16   ;;  %95 = vperm.xlu0 %444, %v88_v14  }
  0x20   :  { %403 = vmatpush3.msra.mxu0 %v123_v17  ;;  %426 = vmatmul.mubr.msk.f32.gmra.mxu1 %vm230_vm2, %v38_v29 }
  0x21   :  { %404 = vmatprep.subr.mxu0 %v122_v20 }
  0x22   :  { %405 = vmatpush3.msra.mxu0 %v122_v20 }
  0x23   :  { %442 = vset.pattern.permute.xlu1 %v494_v7  ;;  %101 = vperm.xlu0 %444, %v90_v19  }
  0x24   :  { %74 = vperm.xlu1 %442, %v65_v22   ;;  %406 = vmatprep.subr.mxu0 %v121_v23 }
  0x25   :  { %407 = vmatpush3.msra.mxu0 %v121_v23 }
  0x26   :  { %408 = vmatprep.subr.mxu0 %v120_v25 }
  0x27   :  { %409 = vmatpush3.msra.mxu0 %v120_v25 }
  0x28   :  { %77 = vperm.xlu1 %442, %v66_v24   ;;  %410 = vmatprep.subr.mxu0 %v119_v26 }
  0x29   :  { %411 = vmatpush3.msra.mxu0 %v119_v26 }
  0x2c   :  { %445 = vset.pattern.permute.xlu1 %v495_v11 }
  0x2d   :  { %98 = vperm.xlu1 %445, %v89_v27  }
  0x8b   :  { %v52_v31 = vpop.permute.xlu1 %51  ;;  %v49_v32 = vpop.permute.xlu0 %48 }
  0x8c   :  { %vm59_vm3 = vcmp.eq.s32.totalorder %v46_v33, %v49_v32  ;;  %vm60_vm10 = vcmp.eq.s32.totalorder %v46_v33, %v52_v31 }
  0x90   :  { %v72_v34 = vpop.permute.xlu1 %71  ;;  %v69_v35 = vpop.permute.xlu0 %68 }
  0x91   :  { %vm79_vm4 = vcmp.eq.s32.totalorder %v46_v33, %v69_v35  ;;  %vm80_vm9 = vcmp.eq.s32.totalorder %v46_v33, %v72_v34 }
  0x92   :  { %vm83_vm5 = vmor %vm59_vm3, %vm79_vm4 }
  0x93   :  { %vm84_vm11 = vmor %vm60_vm10, %vm80_vm9 }
  0x95   :  { %v93_v36 = vpop.permute.xlu1 %92  ;;  %v58_v37 = vpop.permute.xlu0 %57 }
  0x96   :  { %vm103_vm6 = vcmp.eq.s32.totalorder %v46_v33, %v93_v36  ;;  %vm62_vm15 = vcmp.eq.s32.totalorder %v46_v33, %v58_v37 }
  0x97   :  { %vm107_vm8 = vmor %vm83_vm5, %vm103_vm6 }
  0x98   :  { %v361_v39 = vsel %vm107_vm8, 1.0, %v496_v38 }
  0x99   :  { %412 = vmatprep.mubr.msk.f32.mxu0 %vm128_vm7, %v361_v39 }
  0x9a   :  { %v55_v40 = vpop.permute.xlu1 %54  ;;  %v96_v41 = vpop.permute.xlu0 %95 }
  0x9b   :  { %vm104_vm12 = vcmp.eq.s32.totalorder %v46_v33, %v96_v41  ;;  %vm61_vm3 = vcmp.eq.s32.totalorder %v46_v33, %v55_v40 }
  0x9c   :  { %vm108_vm13 = vmor %vm84_vm11, %vm104_vm12 }
  0x9d   :  { %v362_v42 = vsel %vm108_vm13, 1.0, %v496_v38 }
  0x9e   :  { %413 = vmatmul.mubr.msk.f32.vlgmr.msra.gmra.mxu0 %vm128_vm7, %v362_v42  ;;  %v102_v45 = vpop.permute.xlu0 %101 }
  0x9f   :  { %v75_v43 = vpop.permute.xlu1 %74  ;;  %vm106_vm2 = vcmp.eq.s32.totalorder %v46_v33, %v102_v45 }
  0xa0   :  { %vm81_vm0 = vcmp.eq.s32.totalorder %v46_v33, %v75_v43 }
  0xa1   :  { %vm85_vm4 = vmor %vm61_vm3, %vm81_vm0 }
  0xa3   :  { %v78_v44 = vpop.permute.xlu1 %77 }
  0xa4   :  { %vm82_vm14 = vcmp.eq.s32.totalorder %v46_v33, %v78_v44 }
  0xa5   :  { %vm86_vm1 = vmor %vm62_vm15, %vm82_vm14 }
  0xa6   :  { %vm110_vm5 = vmor %vm86_vm1, %vm106_vm2 }
  0xa7   :  { %v364_v48 = vsel %vm110_vm5, 1.0, %v496_v38 }
  0xa8   :  { %v99_v46 = vpop.permute.xlu1 %98 }
  0xa9   :  { %vm105_vm6 = vcmp.eq.s32.totalorder %v46_v33, %v99_v46 }
  0xaa   :  { %vm109_vm8 = vmor %vm85_vm4, %vm105_vm6 }
  0xab   :  { %v363_v47 = vsel %vm109_vm8, 1.0, %v496_v38 }
  0xac   :  { %415 = vmatprep.mubr.msk.f32.mxu0 %vm128_vm7, %v363_v47 }
  0xad   :  { %416 = vmatmul.mubr.msk.f32.gmra.mxu0 %vm128_vm7, %v364_v48 }
  0xdb   :  { %v424_v49 = vpop.f32.mrf.mxu1 }
  0xdd   :  { %v313_v52 = vpop.f32.mrf.mxu1 }
  0xe0   :  { %v427_v59 = vpop.f32.mrf.mxu1 }
  0xe2   :  { %v323_v63 = vpop.f32.mrf.mxu1 }
 0x15e   :  { %v414_v50 = vpop.f32.mrf.mxu0 }
 0x15f   :  { %v319_v53 = vadd.f32 %v424_v49, %v414_v50 }
 0x160   :  { %v211_v54 = vpop.f32.mrf.mxu0 }
 0x161   :  { %v337_v56 = vadd.f32 %v333_v51, %v319_v53  ;;  %v314_v57 = vadd.f32 %v313_v52, %v211_v54 }
 0x163   :  { %341 = vst [vmem:[#allocation5 + $0x8] sm:$0xff] %v337_v56  ;;  %v336_v58 = vadd.f32 %v332_v55, %v314_v57 }
 0x165   :  { %340 = vst [vmem:[#allocation5] sm:$0xff] %v336_v58 }
 0x16d   :  { %v417_v60 = vpop.f32.mrf.mxu0 }
 0x16e   :  { %v329_v62 = vadd.f32 %v427_v59, %v417_v60 }
 0x16f   :  { %v221_v0 = vpop.f32.mrf.mxu0 }
 0x170   :  { %v339_v2 = vadd.f32 %v335_v61, %v329_v62  ;;  %v324_v3 = vadd.f32 %v323_v63, %v221_v0 }
 0x172   :  { %343 = vst [vmem:[#allocation5 + $0x18] sm:$0xff] %v339_v2  ;;  %v338_v4 = vadd.f32 %v334_v1, %v324_v3 }
 0x174   :  { %342 = vst [vmem:[#allocation5 + $0x10] sm:$0xff] %v338_v4 }
 0x175   :  { %477 = shalt.err (!%p474_p9)
}
 0x176   :  { %355 = dma.vmem_to_hbm [thread:$0]  %s350_s3, 512, %s610_s5, [#allocation4], %s491_s21, %s491_s21, %s492_s22  }
 0x177   :  { %488 = dma.done.wait [#allocation4], 512  }
 0x178   :  { %489 = vsyncadd [#allocation4], 4294966784 }
 0x179   :  { %359 = vsyncpa [#allocation3], 1 }
 0x17a   :  { %360 = vsyncpa [#allocation4], 1 }

</bundles_post_ra>
